<compile_context>
chip_gen: v7x
topology: tpu7x:2x2x1
jax: 0.10.0
libtpu: 0.0.40
codegen_flags: <defaults>
</compile_context>

<pallas_src>
import jax
import jax.numpy as jnp
from jax.experimental import pallas as pl
from jax.experimental.pallas import tpu as pltpu


def _gdfn_kernel(w_ref, x_ref, o_ref):
    # w_ref: (hidden, C) f32 weights in SMEM (cheap scalar reads)
    # x_ref: (1, C, T)   input tile in VMEM: channels on sublanes, spatial on lanes
    # o_ref: (1, hidden, T) output tile in VMEM, lane-dense along T
    C = x_ref.shape[1]
    hidden = o_ref.shape[1]

    x = x_ref[0].astype(jnp.float32)                  # (C, T)
    inv_sqrt2 = jnp.float32(0.7071067811865476)

    # Statically-unrolled tiny contraction on the VPU (C*hidden FMAs per lane-vector).
    for o in range(hidden):
        y = w_ref[o, 0] * x[0]
        for c in range(1, C):
            y = y + w_ref[o, c] * x[c]
        # exact (erf) GELU — matches torch.nn.functional.gelu default — then gate by y
        g = 0.5 * y * (1.0 + jax.lax.erf(y * inv_sqrt2))
        o_ref[0, o, :] = (g * y).astype(o_ref.dtype)


def gdfn_forward(x_nchw, w_conv, *, max_tile_hw=2048):
    """x_nchw: (N, C, H, W) float32. w_conv: (hidden, C, 1, 1) float32 (project_in weight)."""
    N, C, H, W = x_nchw.shape
    hidden = w_conv.shape[0]
    HW = H * W

    # Free (no-data-movement) views: NCHW -> (N, C, HW), (hidden, C, 1, 1) -> (hidden, C)
    x_flat = x_nchw.reshape(N, C, HW)
    w_mat = w_conv.reshape(hidden, C)

    # Spatial tile: largest multiple of 128 that divides HW (lane-dense stores),
    # capped so double-buffered in/out tiles stay comfortably inside VMEM on v7x.
    if HW % 128 == 0:
        tile = 128
        t = 128
        while t <= min(HW, max_tile_hw):
            if HW % t == 0:
                tile = t
            t += 128
    else:
        # TODO(synk): if HW is huge and not a multiple of 128, pad HW instead of
        # falling back to a full-extent block.
        tile = HW
    n_hw_tiles = HW // tile

    grid = (N, n_hw_tiles)

    # Advisory cost estimate: this op is bytes-dominated.
    cost = pl.CostEstimate(
        flops=2 * N * HW * C * hidden + 10 * N * HW * hidden,
        transcendentals=N * HW * hidden,
        bytes_accessed=4 * (x_flat.size + w_mat.size + N * hidden * HW),
    )

    out_flat = pl.pallas_call(
        _gdfn_kernel,
        out_shape=jax.ShapeDtypeStruct((N, hidden, HW), x_nchw.dtype),
        grid_spec=pltpu.PrefetchScalarGridSpec(
            num_scalar_prefetch=0,
            grid=grid,
            in_specs=[
                # Whole (hidden, C) weight lives in SMEM for scalar broadcast-FMAs.
                pl.BlockSpec(memory_space=pltpu.MemorySpace.SMEM),
                # Input: per (batch, spatial-tile) block, channels untiled (full extent).
                pl.BlockSpec((1, C, tile), lambda n, s: (n, 0, s)),
            ],
            out_specs=pl.BlockSpec((1, hidden, tile), lambda n, s: (n, 0, s)),
        ),
        compiler_params=pltpu.CompilerParams(
            dimension_semantics=("parallel", "parallel"),
            vmem_limit_bytes=32 * 1024 * 1024,
        ),
        cost_estimate=cost,
    )(w_mat, x_flat)

    # (N, hidden, HW) -> (N, hidden, H, W): pure reshape, no transpose.
    return out_flat.reshape(N, hidden, H, W)


if __name__ == "__main__":
    # Module hyperparams: channels=4, expansion_factor=2 -> hidden_channels=8
    channels = 4
    expansion_factor = 2
    hidden_channels = int(channels * expansion_factor)

    key = jax.random.PRNGKey(0)
    kx, kw = jax.random.split(key)

    # Input: NCHW, batch=2, channels=4, spatial=16x16
    x = jax.random.normal(kx, (2, channels, 16, 16), dtype=jnp.float32)
    # project_in weight: (hidden_channels, channels, 1, 1), no bias
    w_project_in = jax.random.normal(
        kw, (hidden_channels, channels, 1, 1), dtype=jnp.float32
    ) * 0.1
    # NOTE: conv1_1 / conv3_3 / conv5_5 / project_out are defined in __init__
    # but never used in forward(), so they are not part of the kernel.

    out = gdfn_forward(x, w_project_in)
    out = jax.block_until_ready(out)

    # Pure-JAX reference of the same math.
    y_ref = jnp.einsum(
        "nchw,oc->nohw", x, w_project_in.reshape(hidden_channels, channels)
    )
    ref = jax.nn.gelu(y_ref, approximate=False) * y_ref
    assert out.shape == (2, hidden_channels, 16, 16)
    assert jnp.allclose(out, ref, atol=1e-5, rtol=1e-5)

    print("KERNEL_OK")
</pallas_src>

<mosaic_0001>
module attributes {stable_mosaic.version = 11 : i64} {
  func.func @_gdfn_kernel(%arg0: i32, %arg1: i32, %arg2: memref<8x4xf32, #tpu.memory_space<smem>>, %arg3: memref<1x4x256xf32, #tpu.memory_space<vmem>>, %arg4: memref<1x8x256xf32, #tpu.memory_space<vmem>>) attributes {dimension_semantics = [#tpu.dimension_semantics<parallel>, #tpu.dimension_semantics<parallel>], iteration_bounds = array<i64: 2, 1>, scalar_prefetch = 0 : i64, scratch_operands = 0 : i64, tpu.core_type = #tpu.core_type<tc>, window_params = [{transform_indices = @transform_0, window_bounds = array<i64: 8, 4>}, {transform_indices = @transform_1, window_bounds = array<i64: 1, 4, 256>}, {transform_indices = @transform_2, window_bounds = array<i64: 1, 8, 256>}]} {
    %c0 = arith.constant 0 : index
    %c0_0 = arith.constant 0 : index
    %c0_1 = arith.constant 0 : index
    %0 = vector.load %arg3[%c0, %c0_0, %c0_1] : memref<1x4x256xf32, #tpu.memory_space<vmem>>, vector<1x4x256xf32>
    %1 = vector.shape_cast %0 : vector<1x4x256xf32> to vector<4x256xf32>
    %c0_2 = arith.constant 0 : index
    %c0_3 = arith.constant 0 : index
    %2 = memref.load %arg2[%c0_2, %c0_3] : memref<8x4xf32, #tpu.memory_space<smem>>
    %3 = vector.extract_strided_slice %1 {offsets = [0, 0], sizes = [1, 256], strides = [1, 1]} : vector<4x256xf32> to vector<1x256xf32>
    %4 = vector.shape_cast %3 : vector<1x256xf32> to vector<256xf32>
    %5 = vector.broadcast %2 : f32 to vector<256xf32>
    %6 = arith.mulf %5, %4 : vector<256xf32>
    %c0_4 = arith.constant 0 : index
    %c1 = arith.constant 1 : index
    %7 = memref.load %arg2[%c0_4, %c1] : memref<8x4xf32, #tpu.memory_space<smem>>
    %8 = vector.extract_strided_slice %1 {offsets = [1, 0], sizes = [1, 256], strides = [1, 1]} : vector<4x256xf32> to vector<1x256xf32>
    %9 = vector.shape_cast %8 : vector<1x256xf32> to vector<256xf32>
    %10 = vector.broadcast %7 : f32 to vector<256xf32>
    %11 = arith.mulf %10, %9 : vector<256xf32>
    %12 = arith.addf %6, %11 : vector<256xf32>
    %c0_5 = arith.constant 0 : index
    %c2 = arith.constant 2 : index
    %13 = memref.load %arg2[%c0_5, %c2] : memref<8x4xf32, #tpu.memory_space<smem>>
    %14 = vector.extract_strided_slice %1 {offsets = [2, 0], sizes = [1, 256], strides = [1, 1]} : vector<4x256xf32> to vector<1x256xf32>
    %15 = vector.shape_cast %14 : vector<1x256xf32> to vector<256xf32>
    %16 = vector.broadcast %13 : f32 to vector<256xf32>
    %17 = arith.mulf %16, %15 : vector<256xf32>
    %18 = arith.addf %12, %17 : vector<256xf32>
    %c0_6 = arith.constant 0 : index
    %c3 = arith.constant 3 : index
    %19 = memref.load %arg2[%c0_6, %c3] : memref<8x4xf32, #tpu.memory_space<smem>>
    %20 = vector.extract_strided_slice %1 {offsets = [3, 0], sizes = [1, 256], strides = [1, 1]} : vector<4x256xf32> to vector<1x256xf32>
    %21 = vector.shape_cast %20 : vector<1x256xf32> to vector<256xf32>
    %22 = vector.broadcast %19 : f32 to vector<256xf32>
    %23 = arith.mulf %22, %21 : vector<256xf32>
    %24 = arith.addf %18, %23 : vector<256xf32>
    %cst = arith.constant 5.000000e-01 : f32
    %25 = vector.broadcast %cst : f32 to vector<256xf32>
    %26 = arith.mulf %25, %24 : vector<256xf32>
    %cst_7 = arith.constant 0.707106769 : f32
    %27 = vector.broadcast %cst_7 : f32 to vector<256xf32>
    %28 = arith.mulf %24, %27 : vector<256xf32>
    %29 = math.erf %28 : vector<256xf32>
    %cst_8 = arith.constant 1.000000e+00 : f32
    %30 = vector.broadcast %cst_8 : f32 to vector<256xf32>
    %31 = arith.addf %30, %29 : vector<256xf32>
    %32 = arith.mulf %26, %31 : vector<256xf32>
    %33 = arith.mulf %32, %24 : vector<256xf32>
    %c0_9 = arith.constant 0 : index
    %c0_10 = arith.constant 0 : index
    %c0_11 = arith.constant 0 : index
    %34 = vector.load %arg4[%c0_9, %c0_10, %c0_11] : memref<1x8x256xf32, #tpu.memory_space<vmem>>, vector<1x1x256xf32>
    %35 = vector.shape_cast %34 : vector<1x1x256xf32> to vector<256xf32>
    %36 = vector.shape_cast %33 : vector<256xf32> to vector<1x1x256xf32>
    tpu.vector_store %arg4[%c0_9, %c0_10, %c0_11], %36 {strides = array<i32>} : memref<1x8x256xf32, #tpu.memory_space<vmem>>, vector<1x1x256xf32>,
    %c1_12 = arith.constant 1 : index
    %c0_13 = arith.constant 0 : index
    %37 = memref.load %arg2[%c1_12, %c0_13] : memref<8x4xf32, #tpu.memory_space<smem>>
    %38 = vector.extract_strided_slice %1 {offsets = [0, 0], sizes = [1, 256], strides = [1, 1]} : vector<4x256xf32> to vector<1x256xf32>
    %39 = vector.shape_cast %38 : vector<1x256xf32> to vector<256xf32>
    %40 = vector.broadcast %37 : f32 to vector<256xf32>
    %41 = arith.mulf %40, %39 : vector<256xf32>
    %c1_14 = arith.constant 1 : index
    %c1_15 = arith.constant 1 : index
    %42 = memref.load %arg2[%c1_14, %c1_15] : memref<8x4xf32, #tpu.memory_space<smem>>
    %43 = vector.extract_strided_slice %1 {offsets = [1, 0], sizes = [1, 256], strides = [1, 1]} : vector<4x256xf32> to vector<1x256xf32>
    %44 = vector.shape_cast %43 : vector<1x256xf32> to vector<256xf32>
    %45 = vector.broadcast %42 : f32 to vector<256xf32>
    %46 = arith.mulf %45, %44 : vector<256xf32>
    %47 = arith.addf %41, %46 : vector<256xf32>
    %c1_16 = arith.constant 1 : index
    %c2_17 = arith.constant 2 : index
    %48 = memref.load %arg2[%c1_16, %c2_17] : memref<8x4xf32, #tpu.memory_space<smem>>
    %49 = vector.extract_strided_slice %1 {offsets = [2, 0], sizes = [1, 256], strides = [1, 1]} : vector<4x256xf32> to vector<1x256xf32>
    %50 = vector.shape_cast %49 : vector<1x256xf32> to vector<256xf32>
    %51 = vector.broadcast %48 : f32 to vector<256xf32>
    %52 = arith.mulf %51, %50 : vector<256xf32>
    %53 = arith.addf %47, %52 : vector<256xf32>
    %c1_18 = arith.constant 1 : index
    %c3_19 = arith.constant 3 : index
    %54 = memref.load %arg2[%c1_18, %c3_19] : memref<8x4xf32, #tpu.memory_space<smem>>
    %55 = vector.extract_strided_slice %1 {offsets = [3, 0], sizes = [1, 256], strides = [1, 1]} : vector<4x256xf32> to vector<1x256xf32>
    %56 = vector.shape_cast %55 : vector<1x256xf32> to vector<256xf32>
    %57 = vector.broadcast %54 : f32 to vector<256xf32>
    %58 = arith.mulf %57, %56 : vector<256xf32>
    %59 = arith.addf %53, %58 : vector<256xf32>
    %cst_20 = arith.constant 5.000000e-01 : f32
    %60 = vector.broadcast %cst_20 : f32 to vector<256xf32>
    %61 = arith.mulf %60, %59 : vector<256xf32>
    %cst_21 = arith.constant 0.707106769 : f32
    %62 = vector.broadcast %cst_21 : f32 to vector<256xf32>
    %63 = arith.mulf %59, %62 : vector<256xf32>
    %64 = math.erf %63 : vector<256xf32>
    %cst_22 = arith.constant 1.000000e+00 : f32
    %65 = vector.broadcast %cst_22 : f32 to vector<256xf32>
    %66 = arith.addf %65, %64 : vector<256xf32>
    %67 = arith.mulf %61, %66 : vector<256xf32>
    %68 = arith.mulf %67, %59 : vector<256xf32>
    %c0_23 = arith.constant 0 : index
    %c1_24 = arith.constant 1 : index
    %c0_25 = arith.constant 0 : index
    %69 = vector.load %arg4[%c0_23, %c1_24, %c0_25] : memref<1x8x256xf32, #tpu.memory_space<vmem>>, vector<1x1x256xf32>
    %70 = vector.shape_cast %69 : vector<1x1x256xf32> to vector<256xf32>
    %71 = vector.shape_cast %68 : vector<256xf32> to vector<1x1x256xf32>
    tpu.vector_store %arg4[%c0_23, %c1_24, %c0_25], %71 {strides = array<i32>} : memref<1x8x256xf32, #tpu.memory_space<vmem>>, vector<1x1x256xf32>,
    %c2_26 = arith.constant 2 : index
    %c0_27 = arith.constant 0 : index
    %72 = memref.load %arg2[%c2_26, %c0_27] : memref<8x4xf32, #tpu.memory_space<smem>>
    %73 = vector.extract_strided_slice %1 {offsets = [0, 0], sizes = [1, 256], strides = [1, 1]} : vector<4x256xf32> to vector<1x256xf32>
    %74 = vector.shape_cast %73 : vector<1x256xf32> to vector<256xf32>
    %75 = vector.broadcast %72 : f32 to vector<256xf32>
    %76 = arith.mulf %75, %74 : vector<256xf32>
    %c2_28 = arith.constant 2 : index
    %c1_29 = arith.constant 1 : index
    %77 = memref.load %arg2[%c2_28, %c1_29] : memref<8x4xf32, #tpu.memory_space<smem>>
    %78 = vector.extract_strided_slice %1 {offsets = [1, 0], sizes = [1, 256], strides = [1, 1]} : vector<4x256xf32> to vector<1x256xf32>
    %79 = vector.shape_cast %78 : vector<1x256xf32> to vector<256xf32>
    %80 = vector.broadcast %77 : f32 to vector<256xf32>
    %81 = arith.mulf %80, %79 : vector<256xf32>
    %82 = arith.addf %76, %81 : vector<256xf32>
    %c2_30 = arith.constant 2 : index
    %c2_31 = arith.constant 2 : index
    %83 = memref.load %arg2[%c2_30, %c2_31] : memref<8x4xf32, #tpu.memory_space<smem>>
    %84 = vector.extract_strided_slice %1 {offsets = [2, 0], sizes = [1, 256], strides = [1, 1]} : vector<4x256xf32> to vector<1x256xf32>
    %85 = vector.shape_cast %84 : vector<1x256xf32> to vector<256xf32>
    %86 = vector.broadcast %83 : f32 to vector<256xf32>
    %87 = arith.mulf %86, %85 : vector<256xf32>
    %88 = arith.addf %82, %87 : vector<256xf32>
    %c2_32 = arith.constant 2 : index
    %c3_33 = arith.constant 3 : index
    %89 = memref.load %arg2[%c2_32, %c3_33] : memref<8x4xf32, #tpu.memory_space<smem>>
    %90 = vector.extract_strided_slice %1 {offsets = [3, 0], sizes = [1, 256], strides = [1, 1]} : vector<4x256xf32> to vector<1x256xf32>
    %91 = vector.shape_cast %90 : vector<1x256xf32> to vector<256xf32>
    %92 = vector.broadcast %89 : f32 to vector<256xf32>
    %93 = arith.mulf %92, %91 : vector<256xf32>
    %94 = arith.addf %88, %93 : vector<256xf32>
    %cst_34 = arith.constant 5.000000e-01 : f32
    %95 = vector.broadcast %cst_34 : f32 to vector<256xf32>
    %96 = arith.mulf %95, %94 : vector<256xf32>
    %cst_35 = arith.constant 0.707106769 : f32
    %97 = vector.broadcast %cst_35 : f32 to vector<256xf32>
    %98 = arith.mulf %94, %97 : vector<256xf32>
    %99 = math.erf %98 : vector<256xf32>
    %cst_36 = arith.constant 1.000000e+00 : f32
    %100 = vector.broadcast %cst_36 : f32 to vector<256xf32>
    %101 = arith.addf %100, %99 : vector<256xf32>
    %102 = arith.mulf %96, %101 : vector<256xf32>
    %103 = arith.mulf %102, %94 : vector<256xf32>
    %c0_37 = arith.constant 0 : index
    %c2_38 = arith.constant 2 : index
    %c0_39 = arith.constant 0 : index
    %104 = vector.load %arg4[%c0_37, %c2_38, %c0_39] : memref<1x8x256xf32, #tpu.memory_space<vmem>>, vector<1x1x256xf32>
    %105 = vector.shape_cast %104 : vector<1x1x256xf32> to vector<256xf32>
    %106 = vector.shape_cast %103 : vector<256xf32> to vector<1x1x256xf32>
    tpu.vector_store %arg4[%c0_37, %c2_38, %c0_39], %106 {strides = array<i32>} : memref<1x8x256xf32, #tpu.memory_space<vmem>>, vector<1x1x256xf32>,
    %c3_40 = arith.constant 3 : index
    %c0_41 = arith.constant 0 : index
    %107 = memref.load %arg2[%c3_40, %c0_41] : memref<8x4xf32, #tpu.memory_space<smem>>
    %108 = vector.extract_strided_slice %1 {offsets = [0, 0], sizes = [1, 256], strides = [1, 1]} : vector<4x256xf32> to vector<1x256xf32>
    %109 = vector.shape_cast %108 : vector<1x256xf32> to vector<256xf32>
    %110 = vector.broadcast %107 : f32 to vector<256xf32>
    %111 = arith.mulf %110, %109 : vector<256xf32>
    %c3_42 = arith.constant 3 : index
    %c1_43 = arith.constant 1 : index
    %112 = memref.load %arg2[%c3_42, %c1_43] : memref<8x4xf32, #tpu.memory_space<smem>>
    %113 = vector.extract_strided_slice %1 {offsets = [1, 0], sizes = [1, 256], strides = [1, 1]} : vector<4x256xf32> to vector<1x256xf32>
    %114 = vector.shape_cast %113 : vector<1x256xf32> to vector<256xf32>
    %115 = vector.broadcast %112 : f32 to vector<256xf32>
    %116 = arith.mulf %115, %114 : vector<256xf32>
    %117 = arith.addf %111, %116 : vector<256xf32>
    %c3_44 = arith.constant 3 : index
    %c2_45 = arith.constant 2 : index
    %118 = memref.load %arg2[%c3_44, %c2_45] : memref<8x4xf32, #tpu.memory_space<smem>>
    %119 = vector.extract_strided_slice %1 {offsets = [2, 0], sizes = [1, 256], strides = [1, 1]} : vector<4x256xf32> to vector<1x256xf32>
    %120 = vector.shape_cast %119 : vector<1x256xf32> to vector<256xf32>
    %121 = vector.broadcast %118 : f32 to vector<256xf32>
    %122 = arith.mulf %121, %120 : vector<256xf32>
    %123 = arith.addf %117, %122 : vector<256xf32>
    %c3_46 = arith.constant 3 : index
    %c3_47 = arith.constant 3 : index
    %124 = memref.load %arg2[%c3_46, %c3_47] : memref<8x4xf32, #tpu.memory_space<smem>>
    %125 = vector.extract_strided_slice %1 {offsets = [3, 0], sizes = [1, 256], strides = [1, 1]} : vector<4x256xf32> to vector<1x256xf32>
    %126 = vector.shape_cast %125 : vector<1x256xf32> to vector<256xf32>
    %127 = vector.broadcast %124 : f32 to vector<256xf32>
    %128 = arith.mulf %127, %126 : vector<256xf32>
    %129 = arith.addf %123, %128 : vector<256xf32>
    %cst_48 = arith.constant 5.000000e-01 : f32
    %130 = vector.broadcast %cst_48 : f32 to vector<256xf32>
    %131 = arith.mulf %130, %129 : vector<256xf32>
    %cst_49 = arith.constant 0.707106769 : f32
    %132 = vector.broadcast %cst_49 : f32 to vector<256xf32>
    %133 = arith.mulf %129, %132 : vector<256xf32>
    %134 = math.erf %133 : vector<256xf32>
    %cst_50 = arith.constant 1.000000e+00 : f32
    %135 = vector.broadcast %cst_50 : f32 to vector<256xf32>
    %136 = arith.addf %135, %134 : vector<256xf32>
    %137 = arith.mulf %131, %136 : vector<256xf32>
    %138 = arith.mulf %137, %129 : vector<256xf32>
    %c0_51 = arith.constant 0 : index
    %c3_52 = arith.constant 3 : index
    %c0_53 = arith.constant 0 : index
    %139 = vector.load %arg4[%c0_51, %c3_52, %c0_53] : memref<1x8x256xf32, #tpu.memory_space<vmem>>, vector<1x1x256xf32>
    %140 = vector.shape_cast %139 : vector<1x1x256xf32> to vector<256xf32>
    %141 = vector.shape_cast %138 : vector<256xf32> to vector<1x1x256xf32>
    tpu.vector_store %arg4[%c0_51, %c3_52, %c0_53], %141 {strides = array<i32>} : memref<1x8x256xf32, #tpu.memory_space<vmem>>, vector<1x1x256xf32>,
    %c4 = arith.constant 4 : index
    %c0_54 = arith.constant 0 : index
    %142 = memref.load %arg2[%c4, %c0_54] : memref<8x4xf32, #tpu.memory_space<smem>>
    %143 = vector.extract_strided_slice %1 {offsets = [0, 0], sizes = [1, 256], strides = [1, 1]} : vector<4x256xf32> to vector<1x256xf32>
    %144 = vector.shape_cast %143 : vector<1x256xf32> to vector<256xf32>
    %145 = vector.broadcast %142 : f32 to vector<256xf32>
    %146 = arith.mulf %145, %144 : vector<256xf32>
    %c4_55 = arith.constant 4 : index
    %c1_56 = arith.constant 1 : index
    %147 = memref.load %arg2[%c4_55, %c1_56] : memref<8x4xf32, #tpu.memory_space<smem>>
    %148 = vector.extract_strided_slice %1 {offsets = [1, 0], sizes = [1, 256], strides = [1, 1]} : vector<4x256xf32> to vector<1x256xf32>
    %149 = vector.shape_cast %148 : vector<1x256xf32> to vector<256xf32>
    %150 = vector.broadcast %147 : f32 to vector<256xf32>
    %151 = arith.mulf %150, %149 : vector<256xf32>
    %152 = arith.addf %146, %151 : vector<256xf32>
    %c4_57 = arith.constant 4 : index
    %c2_58 = arith.constant 2 : index
    %153 = memref.load %arg2[%c4_57, %c2_58] : memref<8x4xf32, #tpu.memory_space<smem>>
    %154 = vector.extract_strided_slice %1 {offsets = [2, 0], sizes = [1, 256], strides = [1, 1]} : vector<4x256xf32> to vector<1x256xf32>
    %155 = vector.shape_cast %154 : vector<1x256xf32> to vector<256xf32>
    %156 = vector.broadcast %153 : f32 to vector<256xf32>
    %157 = arith.mulf %156, %155 : vector<256xf32>
    %158 = arith.addf %152, %157 : vector<256xf32>
    %c4_59 = arith.constant 4 : index
    %c3_60 = arith.constant 3 : index
    %159 = memref.load %arg2[%c4_59, %c3_60] : memref<8x4xf32, #tpu.memory_space<smem>>
    %160 = vector.extract_strided_slice %1 {offsets = [3, 0], sizes = [1, 256], strides = [1, 1]} : vector<4x256xf32> to vector<1x256xf32>
    %161 = vector.shape_cast %160 : vector<1x256xf32> to vector<256xf32>
    %162 = vector.broadcast %159 : f32 to vector<256xf32>
    %163 = arith.mulf %162, %161 : vector<256xf32>
    %164 = arith.addf %158, %163 : vector<256xf32>
    %cst_61 = arith.constant 5.000000e-01 : f32
    %165 = vector.broadcast %cst_61 : f32 to vector<256xf32>
    %166 = arith.mulf %165, %164 : vector<256xf32>
    %cst_62 = arith.constant 0.707106769 : f32
    %167 = vector.broadcast %cst_62 : f32 to vector<256xf32>
    %168 = arith.mulf %164, %167 : vector<256xf32>
    %169 = math.erf %168 : vector<256xf32>
    %cst_63 = arith.constant 1.000000e+00 : f32
    %170 = vector.broadcast %cst_63 : f32 to vector<256xf32>
    %171 = arith.addf %170, %169 : vector<256xf32>
    %172 = arith.mulf %166, %171 : vector<256xf32>
    %173 = arith.mulf %172, %164 : vector<256xf32>
    %c0_64 = arith.constant 0 : index
    %c4_65 = arith.constant 4 : index
    %c0_66 = arith.constant 0 : index
    %174 = vector.load %arg4[%c0_64, %c4_65, %c0_66] : memref<1x8x256xf32, #tpu.memory_space<vmem>>, vector<1x1x256xf32>
    %175 = vector.shape_cast %174 : vector<1x1x256xf32> to vector<256xf32>
    %176 = vector.shape_cast %173 : vector<256xf32> to vector<1x1x256xf32>
    tpu.vector_store %arg4[%c0_64, %c4_65, %c0_66], %176 {strides = array<i32>} : memref<1x8x256xf32, #tpu.memory_space<vmem>>, vector<1x1x256xf32>,
    %c5 = arith.constant 5 : index
    %c0_67 = arith.constant 0 : index
    %177 = memref.load %arg2[%c5, %c0_67] : memref<8x4xf32, #tpu.memory_space<smem>>
    %178 = vector.extract_strided_slice %1 {offsets = [0, 0], sizes = [1, 256], strides = [1, 1]} : vector<4x256xf32> to vector<1x256xf32>
    %179 = vector.shape_cast %178 : vector<1x256xf32> to vector<256xf32>
    %180 = vector.broadcast %177 : f32 to vector<256xf32>
    %181 = arith.mulf %180, %179 : vector<256xf32>
    %c5_68 = arith.constant 5 : index
    %c1_69 = arith.constant 1 : index
    %182 = memref.load %arg2[%c5_68, %c1_69] : memref<8x4xf32, #tpu.memory_space<smem>>
    %183 = vector.extract_strided_slice %1 {offsets = [1, 0], sizes = [1, 256], strides = [1, 1]} : vector<4x256xf32> to vector<1x256xf32>
    %184 = vector.shape_cast %183 : vector<1x256xf32> to vector<256xf32>
    %185 = vector.broadcast %182 : f32 to vector<256xf32>
    %186 = arith.mulf %185, %184 : vector<256xf32>
    %187 = arith.addf %181, %186 : vector<256xf32>
    %c5_70 = arith.constant 5 : index
    %c2_71 = arith.constant 2 : index
    %188 = memref.load %arg2[%c5_70, %c2_71] : memref<8x4xf32, #tpu.memory_space<smem>>
    %189 = vector.extract_strided_slice %1 {offsets = [2, 0], sizes = [1, 256], strides = [1, 1]} : vector<4x256xf32> to vector<1x256xf32>
    %190 = vector.shape_cast %189 : vector<1x256xf32> to vector<256xf32>
    %191 = vector.broadcast %188 : f32 to vector<256xf32>
    %192 = arith.mulf %191, %190 : vector<256xf32>
    %193 = arith.addf %187, %192 : vector<256xf32>
    %c5_72 = arith.constant 5 : index
    %c3_73 = arith.constant 3 : index
    %194 = memref.load %arg2[%c5_72, %c3_73] : memref<8x4xf32, #tpu.memory_space<smem>>
    %195 = vector.extract_strided_slice %1 {offsets = [3, 0], sizes = [1, 256], strides = [1, 1]} : vector<4x256xf32> to vector<1x256xf32>
    %196 = vector.shape_cast %195 : vector<1x256xf32> to vector<256xf32>
    %197 = vector.broadcast %194 : f32 to vector<256xf32>
    %198 = arith.mulf %197, %196 : vector<256xf32>
    %199 = arith.addf %193, %198 : vector<256xf32>
    %cst_74 = arith.constant 5.000000e-01 : f32
    %200 = vector.broadcast %cst_74 : f32 to vector<256xf32>
    %201 = arith.mulf %200, %199 : vector<256xf32>
    %cst_75 = arith.constant 0.707106769 : f32
    %202 = vector.broadcast %cst_75 : f32 to vector<256xf32>
    %203 = arith.mulf %199, %202 : vector<256xf32>
    %204 = math.erf %203 : vector<256xf32>
    %cst_76 = arith.constant 1.000000e+00 : f32
    %205 = vector.broadcast %cst_76 : f32 to vector<256xf32>
    %206 = arith.addf %205, %204 : vector<256xf32>
    %207 = arith.mulf %201, %206 : vector<256xf32>
    %208 = arith.mulf %207, %199 : vector<256xf32>
    %c0_77 = arith.constant 0 : index
    %c5_78 = arith.constant 5 : index
    %c0_79 = arith.constant 0 : index
    %209 = vector.load %arg4[%c0_77, %c5_78, %c0_79] : memref<1x8x256xf32, #tpu.memory_space<vmem>>, vector<1x1x256xf32>
    %210 = vector.shape_cast %209 : vector<1x1x256xf32> to vector<256xf32>
    %211 = vector.shape_cast %208 : vector<256xf32> to vector<1x1x256xf32>
    tpu.vector_store %arg4[%c0_77, %c5_78, %c0_79], %211 {strides = array<i32>} : memref<1x8x256xf32, #tpu.memory_space<vmem>>, vector<1x1x256xf32>,
    %c6 = arith.constant 6 : index
    %c0_80 = arith.constant 0 : index
    %212 = memref.load %arg2[%c6, %c0_80] : memref<8x4xf32, #tpu.memory_space<smem>>
    %213 = vector.extract_strided_slice %1 {offsets = [0, 0], sizes = [1, 256], strides = [1, 1]} : vector<4x256xf32> to vector<1x256xf32>
    %214 = vector.shape_cast %213 : vector<1x256xf32> to vector<256xf32>
    %215 = vector.broadcast %212 : f32 to vector<256xf32>
    %216 = arith.mulf %215, %214 : vector<256xf32>
    %c6_81 = arith.constant 6 : index
    %c1_82 = arith.constant 1 : index
    %217 = memref.load %arg2[%c6_81, %c1_82] : memref<8x4xf32, #tpu.memory_space<smem>>
    %218 = vector.extract_strided_slice %1 {offsets = [1, 0], sizes = [1, 256], strides = [1, 1]} : vector<4x256xf32> to vector<1x256xf32>
    %219 = vector.shape_cast %218 : vector<1x256xf32> to vector<256xf32>
    %220 = vector.broadcast %217 : f32 to vector<256xf32>
    %221 = arith.mulf %220, %219 : vector<256xf32>
    %222 = arith.addf %216, %221 : vector<256xf32>
    %c6_83 = arith.constant 6 : index
    %c2_84 = arith.constant 2 : index
    %223 = memref.load %arg2[%c6_83, %c2_84] : memref<8x4xf32, #tpu.memory_space<smem>>
    %224 = vector.extract_strided_slice %1 {offsets = [2, 0], sizes = [1, 256], strides = [1, 1]} : vector<4x256xf32> to vector<1x256xf32>
    %225 = vector.shape_cast %224 : vector<1x256xf32> to vector<256xf32>
    %226 = vector.broadcast %223 : f32 to vector<256xf32>
    %227 = arith.mulf %226, %225 : vector<256xf32>
    %228 = arith.addf %222, %227 : vector<256xf32>
    %c6_85 = arith.constant 6 : index
    %c3_86 = arith.constant 3 : index
    %229 = memref.load %arg2[%c6_85, %c3_86] : memref<8x4xf32, #tpu.memory_space<smem>>
    %230 = vector.extract_strided_slice %1 {offsets = [3, 0], sizes = [1, 256], strides = [1, 1]} : vector<4x256xf32> to vector<1x256xf32>
    %231 = vector.shape_cast %230 : vector<1x256xf32> to vector<256xf32>
    %232 = vector.broadcast %229 : f32 to vector<256xf32>
    %233 = arith.mulf %232, %231 : vector<256xf32>
    %234 = arith.addf %228, %233 : vector<256xf32>
    %cst_87 = arith.constant 5.000000e-01 : f32
    %235 = vector.broadcast %cst_87 : f32 to vector<256xf32>
    %236 = arith.mulf %235, %234 : vector<256xf32>
    %cst_88 = arith.constant 0.707106769 : f32
    %237 = vector.broadcast %cst_88 : f32 to vector<256xf32>
    %238 = arith.mulf %234, %237 : vector<256xf32>
    %239 = math.erf %238 : vector<256xf32>
    %cst_89 = arith.constant 1.000000e+00 : f32
    %240 = vector.broadcast %cst_89 : f32 to vector<256xf32>
    %241 = arith.addf %240, %239 : vector<256xf32>
    %242 = arith.mulf %236, %241 : vector<256xf32>
    %243 = arith.mulf %242, %234 : vector<256xf32>
    %c0_90 = arith.constant 0 : index
    %c6_91 = arith.constant 6 : index
    %c0_92 = arith.constant 0 : index
    %244 = vector.load %arg4[%c0_90, %c6_91, %c0_92] : memref<1x8x256xf32, #tpu.memory_space<vmem>>, vector<1x1x256xf32>
    %245 = vector.shape_cast %244 : vector<1x1x256xf32> to vector<256xf32>
    %246 = vector.shape_cast %243 : vector<256xf32> to vector<1x1x256xf32>
    tpu.vector_store %arg4[%c0_90, %c6_91, %c0_92], %246 {strides = array<i32>} : memref<1x8x256xf32, #tpu.memory_space<vmem>>, vector<1x1x256xf32>,
    %c7 = arith.constant 7 : index
    %c0_93 = arith.constant 0 : index
    %247 = memref.load %arg2[%c7, %c0_93] : memref<8x4xf32, #tpu.memory_space<smem>>
    %248 = vector.extract_strided_slice %1 {offsets = [0, 0], sizes = [1, 256], strides = [1, 1]} : vector<4x256xf32> to vector<1x256xf32>
    %249 = vector.shape_cast %248 : vector<1x256xf32> to vector<256xf32>
    %250 = vector.broadcast %247 : f32 to vector<256xf32>
    %251 = arith.mulf %250, %249 : vector<256xf32>
    %c7_94 = arith.constant 7 : index
    %c1_95 = arith.constant 1 : index
    %252 = memref.load %arg2[%c7_94, %c1_95] : memref<8x4xf32, #tpu.memory_space<smem>>
    %253 = vector.extract_strided_slice %1 {offsets = [1, 0], sizes = [1, 256], strides = [1, 1]} : vector<4x256xf32> to vector<1x256xf32>
    %254 = vector.shape_cast %253 : vector<1x256xf32> to vector<256xf32>
    %255 = vector.broadcast %252 : f32 to vector<256xf32>
    %256 = arith.mulf %255, %254 : vector<256xf32>
    %257 = arith.addf %251, %256 : vector<256xf32>
    %c7_96 = arith.constant 7 : index
    %c2_97 = arith.constant 2 : index
    %258 = memref.load %arg2[%c7_96, %c2_97] : memref<8x4xf32, #tpu.memory_space<smem>>
    %259 = vector.extract_strided_slice %1 {offsets = [2, 0], sizes = [1, 256], strides = [1, 1]} : vector<4x256xf32> to vector<1x256xf32>
    %260 = vector.shape_cast %259 : vector<1x256xf32> to vector<256xf32>
    %261 = vector.broadcast %258 : f32 to vector<256xf32>
    %262 = arith.mulf %261, %260 : vector<256xf32>
    %263 = arith.addf %257, %262 : vector<256xf32>
    %c7_98 = arith.constant 7 : index
    %c3_99 = arith.constant 3 : index
    %264 = memref.load %arg2[%c7_98, %c3_99] : memref<8x4xf32, #tpu.memory_space<smem>>
    %265 = vector.extract_strided_slice %1 {offsets = [3, 0], sizes = [1, 256], strides = [1, 1]} : vector<4x256xf32> to vector<1x256xf32>
    %266 = vector.shape_cast %265 : vector<1x256xf32> to vector<256xf32>
    %267 = vector.broadcast %264 : f32 to vector<256xf32>
    %268 = arith.mulf %267, %266 : vector<256xf32>
    %269 = arith.addf %263, %268 : vector<256xf32>
    %cst_100 = arith.constant 5.000000e-01 : f32
    %270 = vector.broadcast %cst_100 : f32 to vector<256xf32>
    %271 = arith.mulf %270, %269 : vector<256xf32>
    %cst_101 = arith.constant 0.707106769 : f32
    %272 = vector.broadcast %cst_101 : f32 to vector<256xf32>
    %273 = arith.mulf %269, %272 : vector<256xf32>
    %274 = math.erf %273 : vector<256xf32>
    %cst_102 = arith.constant 1.000000e+00 : f32
    %275 = vector.broadcast %cst_102 : f32 to vector<256xf32>
    %276 = arith.addf %275, %274 : vector<256xf32>
    %277 = arith.mulf %271, %276 : vector<256xf32>
    %278 = arith.mulf %277, %269 : vector<256xf32>
    %c0_103 = arith.constant 0 : index
    %c7_104 = arith.constant 7 : index
    %c0_105 = arith.constant 0 : index
    %279 = vector.load %arg4[%c0_103, %c7_104, %c0_105] : memref<1x8x256xf32, #tpu.memory_space<vmem>>, vector<1x1x256xf32>
    %280 = vector.shape_cast %279 : vector<1x1x256xf32> to vector<256xf32>
    %281 = vector.shape_cast %278 : vector<256xf32> to vector<1x1x256xf32>
    tpu.vector_store %arg4[%c0_103, %c7_104, %c0_105], %281 {strides = array<i32>} : memref<1x8x256xf32, #tpu.memory_space<vmem>>, vector<1x1x256xf32>,
    return
  }
  func.func @transform_0(%arg0: i32, %arg1: i32) -> (i32, i32) {
    %c0_i32 = arith.constant 0 : i32
    %c0_i32_0 = arith.constant 0 : i32
    %c0_i32_1 = arith.constant 0 : i32
    return %c0_i32, %c0_i32_0 : i32, i32
  }
  func.func @transform_1(%arg0: i32, %arg1: i32) -> (i32, i32, i32) {
    %c0_i32 = arith.constant 0 : i32
    %c0_i32_0 = arith.constant 0 : i32
    return %arg0, %c0_i32, %arg1 : i32, i32, i32
  }
  func.func @transform_2(%arg0: i32, %arg1: i32) -> (i32, i32, i32) {
    %c0_i32 = arith.constant 0 : i32
    %c0_i32_0 = arith.constant 0 : i32
    return %arg0, %c0_i32, %arg1 : i32, i32, i32
  }
}

</mosaic_0001>

<bundles_post_ra>
// kernel: tpu_custom_call.1
= control target key start
LH: loop header
LB: loop body
LE: loop exit
PB: predicated region body
PF: predicated region fallthrough
CT: control target
= control target key end

     0   :  { %7 = vsyncpa [#allocation5], 0  ;;  %s1438_s0 = inlined_call_operand.vmem [shape: f32[8,4], index: 0, kind: input, shape index: {}]   ;;  %s1439_s1 = inlined_call_operand.hbm [shape: f32[2,4,256], index: 1, kind: input, shape index: {}]   ;;  %s1440_s2 = inlined_call_operand.hbm [shape: f32[2,8,256], index: 2, kind: output, shape index: {}]  }
   0x1   :  { %8 = vsyncpa [#allocation3], 0 }
   0x2   :  { %10 = vsyncpa [#allocation3 + $0x1], 0 }
   0x3   :  { %11 = vsyncpa [#allocation4], 0 }
   0x4   :  { %13 = vsyncpa [#allocation4 + $0x1], 0  ;;  %s1050_s9 = smov 0   ;;  %s1052_s10 = smov 0  }
   0x5   :  { %s1054_s11 = smov 0   ;;  %s1056_s12 = smov 0  }
   0x6   :  { %s1058_s13 = smov 0   ;;  %s1060_s14 = smov 0  }
   0x7 LB: > { %s727_s15 = sadd.s32 4294967295, %s1029_s14   ;;  %s728_s16 = sadd.s32 4294967294, %s1029_s14   ;;  %s1029_s14 = sphi %s1060_s14, %s19_s14   ;;  %s1025_s13 = sphi %s1058_s13, %s1464_s13   ;;  %s1021_s12 = sphi %s1056_s12, %s1463_s12   ;;  %s1017_s11 = sphi %s1054_s11, %s1462_s11   ;;  %s1013_s10 = sphi %s1052_s10, %s1461_s10   ;;  %s1009_s9 = sphi %s1050_s9, %s1460_s9  }
   0x8   : > { %p74_p0 = scmp.ne.s32.totalorder %s1013_s10, %s1009_s9  ;;  %p1084_p1 = scmp.eq.s32.totalorder %s727_s15, 0 }
   0x9   : > { %p1088_p2 = scmp.eq.s32.totalorder %s727_s15, 1  ;;  %p106_p3 = scmp.eq.s32.totalorder %s728_s16, 1 }
   0xa   : > { %s1445_s17 = scalar_select %p1084_p1, 1, 0 }
   0xb   : > { %p1094_p4 = por %p1084_p1, %p74_p0  ;;  %p729_p5 = scmp.ge.s32.totalorder %s1029_s14, 1 }
   0xc   : > { %p1099_p6 = por %p106_p3, %p74_p0  ;;  %p113_p7 = scmp.lt.s32.totalorder %s1029_s14, 3 }
   0xd   : > { %s1447_s19 = scalar_select %p1094_p4, 1, 0 }
   0xe   : > { %s1448_s20 = scalar_select %p1099_p6, 1, 0 }
   0xf   : > { %s126_s23 = sshll.u32 %s1438_s0, 4  ;;  %p1107_p8 = pnand %p729_p5, %p113_p7  ;;  %s127_s23 = int_to_ptr.vmem [resolvable:$true] %s126_s23 }
  0x10   : > { %s31_s26 = sadd.s32 1, %s1025_s13  ;;  %s61_s27 = sadd.s32 1, %s1017_s11 }
  0x11   : > { %p816_p10 = pneg %p1107_p8  ;;  %p33_p12 = scmp.ge.s32.totalorder %s31_s26, 2 }
  0x12   : > { %s898_s28 = scalar_lea.vmem %s127_s23, 128  ;;  %p906_p7 = scmp.lt.s32.totalorder %s127_s23, %s127_s23 }
  0x13   : > { %p1116_p11 = pnand %p816_p10, %p1084_p1  ;;  %p899_p13 = scmp.ne.s32.totalorder %s127_s23, %s898_s28 }
  0x14   : > { %p907_p6 = scmp.lt.s32.totalorder %s898_s28, %s898_s28 }
  0x15   : > { %p900_p0 = pneg %p1116_p11 }
  0x16   : > { %p908_p9 = por %p907_p6, %p906_p7 }
  0x17   : > { %p901_p3 = pnand %p900_p0, %p899_p13 }
  0x19   : > { %p902_p5 = pneg %p901_p3 }
  0x1b   : > { %p909_p4 = pnand %p908_p9, %p902_p5 }
  0x1d   : > { %912 = shalt.err (!%p909_p4)
}
  0x1e   : > { %s1031_s29 = smov [#allocation2]   ;;  %s1466_s26 = smov (%p33_p12, %s31_s26), 0 }
  0x1f   : > { %819 = dma.vmem_to_smem (!%p1116_p11), %s127_s23, 128, %s1031_s29, [#allocation5]  }
  0x20   : > { %p68_p10 = scmp.ne.s32.totalorder %s1017_s11, %s1013_s10  ;;  %p69_p6 = scmp.eq.s32.totalorder %s1029_s14, 0 }
  0x21   : > { %s56_s30 = ssub.s32 %s1025_s13, %s1466_s26  ;;  %p829_p4 = scmp.lt.s32.totalorder %s1029_s14, 2 }
  0x22   : > { %p59_p9 = scmp.eq.s32.totalorder %s56_s30, 0  ;;  %p70_p13 = por %p69_p6, %p68_p10 }
  0x23   : > { %p1136_p0 = por %p1088_p2, %p68_p10  ;;  %s137_s4 = sand.u32 1, %s1017_s11  }
  0x24   : > { %s1142_s5 = scalar_select %p59_p9, %s1017_s11, %s61_s27  }
  0x25   : > { %s1451_s3 = scalar_select %p1136_p0, 1, 0 }
  0x26   : > { %s732_s6 = sshll.u32 %s137_s4, 3  ;;  %s806_s7 = sshll.u32 %s1025_s13, 7 }
  0x27   : > { %s1148_s16 = scalar_lea.hbm %s1439_s1, %s806_s7  ;;  %s141_s21 = scalar_lea.vmem [#allocation6], %s732_s6 }
  0x28   : > { %s151_s18 = sshll.u32 %s141_s21, 4  ;;  %p1152_p2 = pnand %p829_p4, %p70_p13  ;;  %s1150_s18 = int_to_ptr.vmem [resolvable:$true] %s151_s18 }
  0x29   : > { %s138_s23 = scalar_lea.sflag [#allocation3], %s137_s4  ;;  %s913_s25 = scalar_lea.hbm %s1148_s16, 128 }
  0x2a   : > { %p914_p11 = scmp.ne.s32.totalorder %s1148_s16, %s913_s25  ;;  %p915_p12 = pneg %p1152_p2 }
  0x2b   : > { %s918_s29 = scalar_lea.hbm %s1439_s1, 256  ;;  %p919_p7 = scmp.lt.u32.totalorder %s1148_s16, %s1439_s1 }
  0x2c   : > { %p916_p3 = pnand %p915_p12, %p914_p11  ;;  %p920_p10 = scmp.lt.u32.totalorder %s918_s29, %s913_s25 }
  0x2d   : > { %p922_p4 = scmp.lt.u32.totalorder %s913_s25, %s1148_s16 }
  0x2e   : > { %p917_p5 = pneg %p916_p3  ;;  %p921_p6 = por %p920_p10, %p919_p7 }
  0x30   : > { %p923_p9 = por %p922_p4, %p921_p6 }
  0x32   : > { %p924_p13 = pnand %p923_p9, %p917_p5 }
  0x34   : > { %927 = shalt.err (!%p924_p13)
}
  0x35   : > { %s928_s4 = scalar_lea.vmem %s1150_s18, 128  ;;  %s1032_s7 = smov [#allocation6]  }
  0x36   : > { %p929_p11 = scmp.ne.s32.totalorder %s1150_s18, %s928_s4  ;;  %s933_s8 = sshll.u32 %s1032_s7, 4  ;;  %s934_s8 = int_to_ptr.vmem [resolvable:$false] %s933_s8 }
  0x37   : > { %s935_s15 = scalar_lea.vmem %s934_s8, 256  ;;  %p936_p1 = scmp.lt.s32.totalorder %s1150_s18, %s934_s8 }
  0x38   : > { %p931_p3 = pnand %p929_p11, %p915_p12  ;;  %p937_p7 = scmp.lt.s32.totalorder %s935_s15, %s928_s4 }
  0x3a   : > { %p932_p0 = pneg %p931_p3  ;;  %p938_p10 = por %p937_p7, %p936_p1 }
  0x3c   : > { %p939_p6 = pnand %p938_p10, %p932_p0 }
  0x3e   : > { %942 = shalt.err (!%p939_p6)
}
  0x3f   : > { %823 = dma.hbm_to_vmem [thread:$0]  (!%p1152_p2), %s1148_s16, 128, %s1150_s18, %s138_s23  }
  0x40   : > { %160 = sbr.rel (%p1107_p8) target bundleno = 162 (0xa2), region = 28  ;;  %p1453_p12 = scmp.ne.s32.totalorder (!%p1107_p8), %s1445_s17, 0 }
  0x47   : > { %996 = dma.done.wait (%p1453_p12), [#allocation5], 128  }
  0x48   : > { %998 = vsyncadd (%p1453_p12), [#allocation5], 4294967168  ;;  %s1188_s21 = sand.u32 1, %s1013_s10   ;;  %p1454_p1 = scmp.ne.s32.totalorder %s1447_s19, 0 }
  0x49   : > { %s737_s25 = sshll.u32 %s1188_s21, 3  ;;  %s167_s22 = scalar_lea.sflag [#allocation3], %s1188_s21 }
  0x4a   : > { %s170_s27 = scalar_lea.vmem [#allocation6], %s737_s25 }
  0x4b   : > { %1000 = dma.done.wait (%p1454_p1), %s167_s22, 128  }
  0x4c   : > { %1002 = vsyncadd (%p1454_p1), %s167_s22, 4294967168 }
  0x4d   : > { %175 = sfence }
  0x4e   : > { %s195_s24 = sld [smem:[#allocation2]]  ;;  %s739_s16 = sld [smem:[#allocation2 + $0x1]]  ;;  %v1033_v0 = vmov 1966171168   ;;  %v232_v2 = vlaneseq  ;;  %v1200_v3 = vld [vmem:[%s170_s27] sm:$0xff] }
  0x4f   : > { %s741_s18 = sld [smem:[#allocation2 + $0x2]]  ;;  %s743_s17 = sld [smem:[#allocation2 + $0x3]]  ;;  %v1196_v1 = vunpack.c.l.s4 %v1033_v0 }
  0x50   : > { %s745_s23 = sld [smem:[#allocation2 + $0x80]]  ;;  %s746_s28 = sld [smem:[#allocation2 + $0x81]]  ;;  %v233_v7 = vshrl.u32 %v232_v2, 7  ;;  %vm1307_vm0 = vcmp.lt.s32.totalorder %v232_v2, 256 }
  0x51   : > { %s748_s29 = sld [smem:[#allocation2 + $0x82]]  ;;  %s1198_s30 = sld [smem:[#allocation2 + $0x83]]  ;;  %v231_v6 = vunpack.c.0.s8 %v1196_v1 }
  0x52   : > { %s1202_s6 = sld [smem:[#allocation2 + $0x100]]  ;;  %s1204_s19 = sld [smem:[#allocation2 + $0x101]] }
  0x53   : > { %s1206_s4 = sld [smem:[#allocation2 + $0x102]]  ;;  %s1208_s7 = sld [smem:[#allocation2 + $0x103]]  ;;  %v1263_v55 = vsub.s32 %v231_v6, %v233_v7 }
  0x54   : > { %v196_v4 = vstv %s195_s24  ;;  %v199_v5 = vstv %s739_s16  ;;  %s1212_s8 = sld [smem:[#allocation2 + $0x180]]  ;;  %s1214_s15 = sld [smem:[#allocation2 + $0x181]] }
  0x55   : > { %v197_v8 = vmul.f32 %v196_v4, %v1200_v3  ;;  %v200_v9 = vmul.f32 %v199_v5, %v1200_v3  ;;  %v207_v10 = vstv %s741_s18  ;;  %v215_v11 = vstv %s743_s17  ;;  %s1220_s25 = sld [smem:[#allocation2 + $0x182]]  ;;  %s1226_s22 = sld [smem:[#allocation2 + $0x183]] }
  0x56   : > { %v208_v12 = vmul.f32 %v207_v10, %v1200_v3  ;;  %v216_v13 = vmul.f32 %v215_v11, %v1200_v3  ;;  %v251_v14 = vstv %s745_s23  ;;  %v254_v15 = vstv %s746_s28  ;;  %s1233_s27 = sld [smem:[#allocation2 + $0x200]]  ;;  %s1236_s24 = sld [smem:[#allocation2 + $0x201]] }
  0x57   : > { %v740_v16 = vrot.slane %v200_v9, 9  ;;  %v252_v17 = vmul.f32 %v251_v14, %v1200_v3  ;;  %v255_v18 = vmul.f32 %v254_v15, %v1200_v3  ;;  %v262_v19 = vstv %s748_s29  ;;  %s1242_s16 = sld [smem:[#allocation2 + $0x202]]  ;;  %s1247_s18 = sld [smem:[#allocation2 + $0x203]] }
  0x58   : > { %v742_v20 = vrot.slane %v208_v12, 10  ;;  %v744_v21 = vrot.slane %v216_v13, 11  ;;  %v263_v22 = vmul.f32 %v262_v19, %v1200_v3  ;;  %v270_v23 = vstv %s1198_s30  ;;  %s1252_s17 = sld [smem:[#allocation2 + $0x280]]  ;;  %s1257_s23 = sld [smem:[#allocation2 + $0x281]] }
  0x59   : > { %v205_v24 = vadd.f32 %v740_v16, %v197_v8  ;;  %v747_v25 = vrot.slane %v255_v18, 9  ;;  %v271_v26 = vmul.f32 %v270_v23, %v1200_v3  ;;  %v303_v27 = vstv %s1202_s6  ;;  %s1261_s28 = sld [smem:[#allocation2 + $0x282]]  ;;  %s1266_s29 = sld [smem:[#allocation2 + $0x283]] }
  0x5a   : > { %v749_v28 = vrot.slane %v263_v22, 10  ;;  %v304_v29 = vmul.f32 %v303_v27, %v1200_v3  ;;  %v306_v30 = vstv %s1204_s19  ;;  %v314_v31 = vstv %s1206_s4  ;;  %s1268_s30 = sld [smem:[#allocation2 + $0x300]]  ;;  %s1276_s6 = sld [smem:[#allocation2 + $0x301]] }
  0x5b   : > { %v213_v32 = vadd.f32 %v742_v20, %v205_v24  ;;  %v260_v33 = vadd.f32 %v747_v25, %v252_v17  ;;  %v751_v34 = vrot.slane %v271_v26, 11  ;;  %v307_v35 = vmul.f32 %v306_v30, %v1200_v3  ;;  %s1278_s19 = sld [smem:[#allocation2 + $0x302]]  ;;  %s1286_s4 = sld [smem:[#allocation2 + $0x303]] }
  0x5c   : > { %v315_v36 = vmul.f32 %v314_v31, %v1200_v3  ;;  %v322_v37 = vstv %s1208_s7  ;;  %v355_v38 = vstv %s1212_s8  ;;  %v358_v39 = vstv %s1214_s15  ;;  %s1296_s7 = sld [smem:[#allocation2 + $0x380]]  ;;  %s1304_s8 = sld [smem:[#allocation2 + $0x381]] }
  0x5d   : > { %v1244_v40 = vadd.f32 %v744_v21, %v213_v32  ;;  %v268_v41 = vadd.f32 %v749_v28, %v260_v33  ;;  %v755_v42 = vrot.slane %v307_v35, 9  ;;  %v323_v43 = vmul.f32 %v322_v37, %v1200_v3  ;;  %s1316_s15 = sld [smem:[#allocation2 + $0x382]]  ;;  %p1457_p0 = scmp.ne.s32.totalorder %s1451_s3, 0 }
  0x5e   : > { %v757_v44 = vrot.slane %v315_v36, 10  ;;  %v356_v45 = vmul.f32 %v355_v38, %v1200_v3  ;;  %v359_v46 = vmul.f32 %v358_v39, %v1200_v3  ;;  %v366_v47 = vstv %s1220_s25  ;;  %s1323_s25 = sld [smem:[#allocation2 + $0x383]] }
  0x5f   : > { %v223_v48 = vmul.f32 0.70710677, %v1244_v40  ;;  %v1255_v49 = vadd.f32 %v751_v34, %v268_v41  ;;  %v312_v50 = vadd.f32 %v755_v42, %v304_v29  ;;  %v759_v51 = vrot.slane %v323_v43, 11 }
  0x60   : > { %v763_v52 = vrot.slane %v359_v46, 9  ;;  %v367_v53 = vmul.f32 %v366_v47, %v1200_v3  ;;  %v374_v54 = vstv %s1226_s22  ;;  %v407_v61 = vstv %s1233_s27  ;;  %s738_s22 = sshll.u32 %s1188_s21, 4 }
  0x61   : > { %882 = verf.f32 %v223_v48  ;;  %v278_v56 = vmul.f32 0.70710677, %v1255_v49  ;;  %v320_v57 = vadd.f32 %v757_v44, %v312_v50  ;;  %v375_v60 = vmul.f32 %v374_v54, %v1200_v3  ;;  %s1338_s27 = scalar_lea.vmem [#allocation7], %s738_s22 }
  0x62   : > { %v364_v58 = vadd.f32 %v763_v52, %v356_v45  ;;  %v765_v59 = vrot.slane %v367_v53, 10  ;;  %v408_v63 = vmul.f32 %v407_v61, %v1200_v3  ;;  %v410_v0 = vstv %s1236_s24  ;;  %s807_s24 = sshll.u32 %s1021_s12, 8 }
  0x63   : > { %884 = verf.f32 %v278_v56  ;;  %v1272_v62 = vadd.f32 %v759_v51, %v320_v57  ;;  %v767_v4 = vrot.slane %v375_v60, 11  ;;  %v411_v5 = vmul.f32 %v410_v0, %v1200_v3 }
  0x64   : > { %v372_v1 = vadd.f32 %v765_v59, %v364_v58  ;;  %v418_v6 = vstv %s1242_s16  ;;  %v222_v7 = vmul.f32 0.5, %v1244_v40  ;;  %v426_v10 = vstv %s1247_s18  ;;  %s631_s16 = sshll.u32 %s1338_s27, 4  ;;  %s1388_s16 = int_to_ptr.vmem [resolvable:$true] %s631_s16 }
  0x65   : > { %v330_v8 = vmul.f32 0.70710677, %v1272_v62  ;;  %v419_v9 = vmul.f32 %v418_v6, %v1200_v3  ;;  %v771_v12 = vrot.slane %v411_v5, 9  ;;  %v427_v13 = vmul.f32 %v426_v10, %v1200_v3  ;;  %s943_s12 = scalar_lea.vmem %s1388_s16, 256 }
  0x66   : > { %v1288_v11 = vadd.f32 %v767_v4, %v372_v1  ;;  %v459_v14 = vstv %s1252_s17  ;;  %v277_v15 = vmul.f32 0.5, %v1255_v49  ;;  %v462_v17 = vstv %s1257_s23  ;;  %s1386_s23 = scalar_lea.hbm %s1440_s2, %s807_s24  ;;  %p944_p8 = scmp.ne.s32.totalorder %s1388_s16, %s943_s12 }
  0x67   : > { %886 = verf.f32 %v330_v8  ;;  %v773_v16 = vrot.slane %v419_v9, 10  ;;  %v416_v19 = vadd.f32 %v771_v12, %v408_v63  ;;  %v775_v20 = vrot.slane %v427_v13, 11 }
  0x68   : > { %v382_v18 = vmul.f32 0.70710677, %v1288_v11  ;;  %v460_v21 = vmul.f32 %v459_v14, %v1200_v3  ;;  %v463_v22 = vmul.f32 %v462_v17, %v1200_v3  ;;  %v470_v23 = vstv %s1261_s28  ;;  %s615_s28 = scalar_lea.sflag [#allocation4], %s1188_s21  ;;  %p945_p2 = pnand %p944_p8, %p1457_p0 }
  0x69   : > { %v478_v24 = vstv %s1266_s29  ;;  %v511_v25 = vstv %s1268_s30  ;;  %v424_v26 = vadd.f32 %v773_v16, %v416_v19  ;;  %v471_v27 = vmul.f32 %v470_v23, %v1200_v3  ;;  %s1034_s29 = smov [#allocation7]  }
  0x6a   : > { %888 = verf.f32 %v382_v18  ;;  %v479_v28 = vmul.f32 %v478_v24, %v1200_v3  ;;  %v779_v31 = vrot.slane %v463_v22, 9  ;;  %v512_v32 = vmul.f32 %v511_v25, %v1200_v3  ;;  %p946_p5 = pneg %p945_p2  ;;  %s947_s30 = sshll.u32 %s1034_s29, 4  ;;  %s948_s30 = int_to_ptr.vmem [resolvable:$false] %s947_s30 }
  0x6b   : > { %v883_v29 = vpop.eup %882  ;;  %v514_v33 = vstv %s1276_s6  ;;  %v522_v34 = vstv %s1278_s19  ;;  %v1314_v36 = vadd.f32 %v775_v20, %v424_v26  ;;  %v781_v37 = vrot.slane %v471_v27, 10  ;;  %s949_s6 = scalar_lea.vmem %s948_s30, 512  ;;  %p950_p4 = scmp.lt.s32.totalorder %s1388_s16, %s948_s30 }
  0x6c   : > { %v225_v35 = vadd.f32 1.0, %v883_v29  ;;  %v783_v38 = vrot.slane %v479_v28, 11  ;;  %v468_v41 = vadd.f32 %v779_v31, %v460_v21  ;;  %v515_v2 = vmul.f32 %v514_v33, %v1200_v3  ;;  %p951_p9 = scmp.lt.s32.totalorder %s949_s6, %s943_s12 }
  0x6d   : > { %v885_v39 = vpop.eup %884  ;;  %v523_v42 = vmul.f32 %v522_v34, %v1200_v3  ;;  %v530_v43 = vstv %s1286_s4  ;;  %v329_v46 = vmul.f32 0.5, %v1272_v62  ;;  %v434_v47 = vmul.f32 0.70710677, %v1314_v36 }
  0x6e   : > { %v226_v44 = vmul.f32 %v225_v35, %v222_v7  ;;  %v280_v45 = vadd.f32 1.0, %v885_v39  ;;  %v476_v48 = vadd.f32 %v781_v37, %v468_v41  ;;  %v787_v50 = vrot.slane %v515_v2, 9  ;;  %p952_p13 = por %p951_p9, %p950_p4 }
  0x6f   : > { %v789_v51 = vrot.slane %v523_v42, 10  ;;  %v531_v52 = vmul.f32 %v530_v43, %v1200_v3  ;;  %890 = verf.f32 %v434_v47  ;;  %v563_v56 = vstv %s1296_s7 }
  0x70   : > { %v227_v53 = vmul.f32 %v226_v44, %v1244_v40  ;;  %v281_v54 = vmul.f32 %v280_v45, %v277_v15  ;;  %v381_v58 = vmul.f32 0.5, %v1288_v11  ;;  %v484_v59 = vadd.f32 %v783_v38, %v476_v48  ;;  %p953_p11 = pnand %p952_p13, %p946_p5 }
  0x71   : > { %v887_v57 = vpop.eup %886  ;;  %v520_v60 = vadd.f32 %v787_v50, %v512_v32  ;;  %v791_v61 = vrot.slane %v531_v52, 11  ;;  %v566_v4 = vstv %s1304_s8  ;;  %v564_v40 = vmul.f32 %v563_v56, %v1200_v3 }
  0x72   : > { %v235_v63 = vrot.slane %v227_v53, %v1263_v55  ;;  %v282_v0 = vmul.f32 %v281_v54, %v1255_v49  ;;  %v332_v1 = vadd.f32 1.0, %v887_v57  ;;  %v486_v5 = vmul.f32 0.70710677, %v484_v59 }
  0x73   : > { %v528_v6 = vadd.f32 %v789_v51, %v520_v60  ;;  %v567_v7 = vmul.f32 %v566_v4, %v1200_v3  ;;  %v574_v13 = vstv %s1316_s15  ;;  %v582_v19 = vstv %s1323_s25 }
  0x74   : > { %v889_v8 = vpop.eup %888  ;;  %v242_v9 = vrot.slane %v235_v63, %v1263_v55  ;;  %v290_v10 = vrot.slane %v282_v0, %v1263_v55  ;;  %v333_v12 = vmul.f32 %v332_v1, %v329_v46  ;;  %892 = verf.f32 %v486_v5 }
  0x75   : > { %v384_v14 = vadd.f32 1.0, %v889_v8  ;;  %v536_v15 = vadd.f32 %v791_v61, %v528_v6  ;;  %v795_v49 = vrot.slane %v567_v7, 9  ;;  %v575_v18 = vmul.f32 %v574_v13, %v1200_v3 }
  0x76   : > { %248 = vst.msk [vmem:[%s1338_s27] ss:$8 sm:$0x3] %vm1307_vm0, %v242_v9  ;;  %v297_v16 = vrot.slane %v290_v10, %v1263_v55  ;;  %v334_v17 = vmul.f32 %v333_v12, %v1272_v62  ;;  %v583_v25 = vmul.f32 %v582_v19, %v1200_v3  ;;  %v433_v62 = vmul.f32 0.5, %v1314_v36 }
  0x77   : > { %v385_v20 = vmul.f32 %v384_v14, %v381_v58  ;;  %v538_v21 = vmul.f32 0.70710677, %v536_v15  ;;  %v572_v22 = vadd.f32 %v795_v49, %v564_v40  ;;  %v797_v24 = vrot.slane %v575_v18, 10 }
  0x78   : > { %752 = vst.msk [vmem:[%s1338_s27 + $0x1] ss:$8 sm:$0x3] %vm1307_vm0, %v297_v16  ;;  %v342_v23 = vrot.slane %v334_v17, %v1263_v55  ;;  %v799_v31 = vrot.slane %v583_v25, 11  ;;  %v485_v35 = vmul.f32 0.5, %v484_v59  ;;  %v537_v43 = vmul.f32 0.5, %v536_v15 }
  0x79   : > { %v386_v26 = vmul.f32 %v385_v20, %v1288_v11  ;;  %894 = verf.f32 %v538_v21  ;;  %v891_v27 = vpop.eup %890  ;;  %v580_v29 = vadd.f32 %v797_v24, %v572_v22 }
  0x7a   : > { %v349_v28 = vrot.slane %v342_v23, %v1263_v55  ;;  %v436_v33 = vadd.f32 1.0, %v891_v27 }
  0x7b   : > { %v394_v32 = vrot.slane %v386_v26, %v1263_v55  ;;  %v588_v34 = vadd.f32 %v799_v31, %v580_v29 }
  0x7c   : > { %760 = vst.msk [vmem:[%s1338_s27 + $0x2] ss:$8 sm:$0x3] %vm1307_vm0, %v349_v28  ;;  %v437_v11 = vmul.f32 %v436_v33, %v433_v62 }
  0x7d   : > { %v401_v3 = vrot.slane %v394_v32, %v1263_v55  ;;  %v590_v37 = vmul.f32 0.70710677, %v588_v34  ;;  %v589_v52 = vmul.f32 0.5, %v588_v34 }
  0x7e   : > { %v893_v38 = vpop.eup %892  ;;  %v438_v39 = vmul.f32 %v437_v11, %v1314_v36 }
  0x7f   : > { %768 = vst.msk [vmem:[%s1338_s27 + $0x3] ss:$8 sm:$0x3] %vm1307_vm0, %v401_v3  ;;  %v488_v41 = vadd.f32 1.0, %v893_v38  ;;  %896 = verf.f32 %v590_v37 }
  0x80   : > { %v446_v2 = vrot.slane %v438_v39, %v1263_v55 }
  0x81   : > { %v489_v42 = vmul.f32 %v488_v41, %v485_v35 }
  0x82   : > { %v453_v45 = vrot.slane %v446_v2, %v1263_v55 }
  0x83   : > { %v895_v44 = vpop.eup %894  ;;  %v490_v46 = vmul.f32 %v489_v42, %v484_v59 }
  0x84   : > { %v540_v47 = vadd.f32 1.0, %v895_v44  ;;  %776 = vst.msk [vmem:[%s1338_s27 + $0x4] ss:$8 sm:$0x3] %vm1307_vm0, %v453_v45 }
  0x85   : > { %v498_v36 = vrot.slane %v490_v46, %v1263_v55 }
  0x86   : > { %v541_v48 = vmul.f32 %v540_v47, %v537_v43 }
  0x87   : > { %v505_v50 = vrot.slane %v498_v36, %v1263_v55 }
  0x88   : > { %v542_v51 = vmul.f32 %v541_v48, %v536_v15 }
  0x89   : > { %v897_v53 = vpop.eup %896  ;;  %784 = vst.msk [vmem:[%s1338_s27 + $0x5] ss:$8 sm:$0x3] %vm1307_vm0, %v505_v50 }
  0x8a   : > { %v550_v54 = vrot.slane %v542_v51, %v1263_v55  ;;  %v592_v56 = vadd.f32 1.0, %v897_v53 }
  0x8c   : > { %v557_v57 = vrot.slane %v550_v54, %v1263_v55  ;;  %v593_v58 = vmul.f32 %v592_v56, %v589_v52 }
  0x8e   : > { %792 = vst.msk [vmem:[%s1338_s27 + $0x6] ss:$8 sm:$0x3] %vm1307_vm0, %v557_v57  ;;  %v594_v59 = vmul.f32 %v593_v58, %v588_v34 }
  0x90   : > { %v602_v60 = vrot.slane %v594_v59, %v1263_v55 }
  0x92   : > { %v609_v61 = vrot.slane %v602_v60, %v1263_v55 }
  0x94   : > { %800 = vst.msk [vmem:[%s1338_s27 + $0x7] ss:$8 sm:$0x3] %vm1307_vm0, %v609_v61 }
  0x95   : > { %956 = shalt.err (!%p953_p11)
}
  0x96   : > { %s957_s21 = scalar_lea.hbm %s1386_s23, 256  ;;  %s961_s7 = scalar_lea.hbm %s1440_s2, 512 }
  0x97   : > { %p958_p3 = scmp.ne.s32.totalorder %s1386_s23, %s957_s21  ;;  %p962_p6 = scmp.lt.u32.totalorder %s1386_s23, %s1440_s2 }
  0x98   : > { %p963_p12 = scmp.lt.u32.totalorder %s961_s7, %s957_s21  ;;  %p965_p8 = scmp.lt.u32.totalorder %s957_s21, %s1386_s23 }
  0x99   : > { %p959_p7 = pnand %p958_p3, %p1457_p0 }
  0x9a   : > { %p964_p1 = por %p963_p12, %p962_p6 }
  0x9b   : > { %p960_p10 = pneg %p959_p7 }
  0x9c   : > { %p966_p2 = por %p965_p8, %p964_p1 }
  0x9e   : > { %p967_p5 = pnand %p966_p2, %p960_p10 }
  0xa0   : > { %970 = shalt.err (!%p967_p5)
}
  0xa1   : > { %814 = dma.vmem_to_hbm [thread:$0]  (%p1457_p0), %s1388_s16, 256, %s1386_s23, %s615_s28  }
  0xa2 PF: > { %s643_s25 = sand.u32 1, %s1009_s9   ;;  %p1458_p4 = scmp.ne.s32.totalorder %s1448_s20, 0 }
  0xa3   : > { %p1459_p9 = scmp.ge.s32.totalorder %s1029_s14, 2  ;;  %s644_s22 = scalar_lea.sflag [#allocation4], %s643_s25 }
  0xa5   : > { %p825_p13 = pnand %p1459_p9, %p1458_p4 }
  0xa7   : > { %1004 = dma.done.wait (!%p825_p13), %s644_s22, 256  }
  0xa8   : > { %1006 = vsyncadd (!%p825_p13), %s644_s22, 4294967040  ;;  %s19_s14 = sadd.s32 1, %s1029_s14   ;;  %s1460_s9 = smov %s1013_s10 }
  0xa9   : > { %p16_p11 = scmp.ge.s32.totalorder %s19_s14, 4   ;;  %s1461_s10 = smov %s1017_s11 }
  0xaa   : > { %s1462_s11 = smov %s1142_s5  ;;  %s1463_s12 = smov %s1025_s13 }
  0xab   : > { %s1464_s13 = smov %s1466_s26  ;;  %18 = sbr.rel (!%p16_p11) target bundleno = 7 (0x7), region = 85 }
  0xb2   :  { %649 = vsyncpa [#allocation3], 1 }
  0xb3   :  { %651 = vsyncpa [#allocation3 + $0x1], 1 }
  0xb4   :  { %652 = vsyncpa [#allocation4], 1 }
  0xb5   :  { %654 = vsyncpa [#allocation4 + $0x1], 1 }
  0xb6   :  { %655 = vsyncpa [#allocation5], 1 }
  0xb7   :  { %657 = vsyncpa [#allocation5 + $0x1], 1 }

</bundles_post_ra>
